<compile_context>
chip_gen: v5e
topology: v5e:2x2
jax: 0.10.0
libtpu: 0.0.40
codegen_flags: <defaults>
</compile_context>

<pallas_src>
import jax
import jax.numpy as jnp
from jax.experimental import pallas as pl
from jax.experimental.pallas import tpu as pltpu


def deepnet_kernel(x_ref,
                   w1_ref, b1_ref,
                   w2_ref, b2_ref,
                   w3_ref, b3_ref,
                   w4_ref, b4_ref,
                   w5_ref, b5_ref,
                   o_ref):
    """One batch tile.  x_ref: (2, TB)  (features on sublanes, batch on lanes).
    w_i: (out, in) PyTorch layout, b_i: (out, 1).  o_ref: (1, TB)."""
    xT = x_ref[...]                      # (2, TB), already f32 (no astype)
    w1 = w1_ref[...]                     # (64, 2)

    # Layer 1: K=2 -> skip the MXU, two VPU broadcast-FMAs instead.
    h = (w1[:, 0:1] * xT[0:1, :]
         + w1[:, 1:2] * xT[1:2, :]
         + b1_ref[...])                  # (64, TB)
    h = jnp.maximum(h, 0.0)

    # Layers 2-4: MXU matmuls with f32 accumulation, fused bias + ReLU on VPU.
    h = jnp.dot(w2_ref[...], h, preferred_element_type=jnp.float32) + b2_ref[...]
    h = jnp.maximum(h, 0.0)              # (128, TB)

    h = jnp.dot(w3_ref[...], h, preferred_element_type=jnp.float32) + b3_ref[...]
    h = jnp.maximum(h, 0.0)              # (128, TB)

    h = jnp.dot(w4_ref[...], h, preferred_element_type=jnp.float32) + b4_ref[...]
    h = jnp.maximum(h, 0.0)              # (64, TB)

    # Layer 5: (1, 64) @ (64, TB) -> (1, TB): output is lane-dense by layout.
    out = jnp.dot(w5_ref[...], h, preferred_element_type=jnp.float32) + b5_ref[...]
    o_ref[...] = out.astype(o_ref.dtype)


def deepnet_forward(x, params, tb=128):
    """x: [B, 2] float32.  params: w_i (out, in) PyTorch layout, b_i (out, 1).
    Returns [B, 1] float32.  tb: batch tile (multiple of 128; 128 is safe on
    v5e/v6e/v7x; 256 is also a good choice on v6e/v7x)."""
    B = x.shape[0]
    grid_len = pl.cdiv(B, tb)
    b_pad = grid_len * tb

    xT = x.T                                   # (2, B) -> batch on lanes
    if b_pad != B:
        xT = jnp.pad(xT, ((0, 0), (0, b_pad - B)))

    args = [xT]
    in_specs = [pl.BlockSpec((2, tb), lambda i: (0, i))]   # batch-tiled input
    for li in range(1, 6):
        w = params[f"w{li}"]
        b = params[f"b{li}"]
        args.extend([w, b])
        # Constant index maps -> weights/biases stay VMEM-resident across steps.
        in_specs.append(pl.BlockSpec(w.shape, lambda i: (0, 0)))
        in_specs.append(pl.BlockSpec(b.shape, lambda i: (0, 0)))

    out = pl.pallas_call(
        deepnet_kernel,
        out_shape=jax.ShapeDtypeStruct((1, b_pad), jnp.float32),
        grid=(grid_len,),
        in_specs=in_specs,
        out_specs=pl.BlockSpec((1, tb), lambda i: (0, i)),   # lane-dense store
        compiler_params=pltpu.CompilerParams(
            dimension_semantics=("parallel",)),
    )(*args)

    return out[:, :B].T                        # (B, 1)


def init_params(key):
    """Deterministic init mirroring nn.Linear: weight (out, in), bias (out, 1),
    uniform in [-1/sqrt(fan_in), 1/sqrt(fan_in)] like torch's default."""
    sizes = [(2, 64), (64, 128), (128, 128), (128, 64), (64, 1)]
    params = {}
    for i, (fan_in, fan_out) in enumerate(sizes, start=1):
        key, kw, kb = jax.random.split(key, 3)
        bound = 1.0 / jnp.sqrt(fan_in)
        params[f"w{i}"] = jax.random.uniform(
            kw, (fan_out, fan_in), jnp.float32, minval=-bound, maxval=bound)
        params[f"b{i}"] = jax.random.uniform(
            kb, (fan_out, 1), jnp.float32, minval=-bound, maxval=bound)
    return params


def reference_forward(x, params):
    """Pure-JAX reference (PyTorch semantics: y = x @ W.T + b)."""
    h = x
    for li in range(1, 5):
        h = jnp.maximum(h @ params[f"w{li}"].T + params[f"b{li}"][:, 0], 0.0)
    return h @ params["w5"].T + params["b5"][:, 0]


if __name__ == "__main__":
    key = jax.random.PRNGKey(0)
    key, kx = jax.random.split(key)

    B = 200  # not a multiple of the tile -> exercises padding + 2 grid steps
    x = jax.random.normal(kx, (B, 2), jnp.float32)
    params = init_params(key)

    out = deepnet_forward(x, params, tb=128)
    out = jax.block_until_ready(out)

    ref = reference_forward(x, params)
    assert out.shape == (B, 1)
    assert jnp.allclose(out, ref.reshape(B, 1), atol=1e-5, rtol=1e-5)

    print("KERNEL_OK")
</pallas_src>

<mosaic_0001>
module attributes {stable_mosaic.version = 11 : i64} {
  func.func @deepnet_kernel(%arg0: i32, %arg1: memref<2x128xf32, #tpu.memory_space<vmem>>, %arg2: memref<64x2xf32, #tpu.memory_space<vmem>>, %arg3: memref<64x1xf32, #tpu.memory_space<vmem>>, %arg4: memref<128x64xf32, #tpu.memory_space<vmem>>, %arg5: memref<128x1xf32, #tpu.memory_space<vmem>>, %arg6: memref<128x128xf32, #tpu.memory_space<vmem>>, %arg7: memref<128x1xf32, #tpu.memory_space<vmem>>, %arg8: memref<64x128xf32, #tpu.memory_space<vmem>>, %arg9: memref<64x1xf32, #tpu.memory_space<vmem>>, %arg10: memref<1x64xf32, #tpu.memory_space<vmem>>, %arg11: memref<1x1xf32, #tpu.memory_space<vmem>>, %arg12: memref<1x128xf32, #tpu.memory_space<vmem>>) attributes {dimension_semantics = [#tpu.dimension_semantics<parallel>], iteration_bounds = array<i64: 2>, scalar_prefetch = 0 : i64, scratch_operands = 0 : i64, tpu.core_type = #tpu.core_type<tc>, window_params = [{transform_indices = @transform_0, window_bounds = array<i64: 2, 128>}, {pipeline_mode = #tpu.pipeline_mode<synchronous>, transform_indices = @transform_1, window_bounds = array<i64: 64, 2>}, {pipeline_mode = #tpu.pipeline_mode<synchronous>, transform_indices = @transform_2, window_bounds = array<i64: 64, 1>}, {pipeline_mode = #tpu.pipeline_mode<synchronous>, transform_indices = @transform_3, window_bounds = array<i64: 128, 64>}, {pipeline_mode = #tpu.pipeline_mode<synchronous>, transform_indices = @transform_4, window_bounds = array<i64: 128, 1>}, {pipeline_mode = #tpu.pipeline_mode<synchronous>, transform_indices = @transform_5, window_bounds = array<i64: 128, 128>}, {pipeline_mode = #tpu.pipeline_mode<synchronous>, transform_indices = @transform_6, window_bounds = array<i64: 128, 1>}, {pipeline_mode = #tpu.pipeline_mode<synchronous>, transform_indices = @transform_7, window_bounds = array<i64: 64, 128>}, {pipeline_mode = #tpu.pipeline_mode<synchronous>, transform_indices = @transform_8, window_bounds = array<i64: 64, 1>}, {pipeline_mode = #tpu.pipeline_mode<synchronous>, transform_indices = @transform_9, window_bounds = array<i64: 1, 64>}, {pipeline_mode = #tpu.pipeline_mode<synchronous>, transform_indices = @transform_10, window_bounds = array<i64: 1, 1>}, {transform_indices = @transform_11, window_bounds = array<i64: 1, 128>}]} {
    %c0 = arith.constant 0 : index
    %c0_0 = arith.constant 0 : index
    %0 = vector.load %arg1[%c0, %c0_0] : memref<2x128xf32, #tpu.memory_space<vmem>>, vector<2x128xf32>
    %c0_1 = arith.constant 0 : index
    %c0_2 = arith.constant 0 : index
    %1 = vector.load %arg2[%c0_1, %c0_2] : memref<64x2xf32, #tpu.memory_space<vmem>>, vector<64x2xf32>
    %2 = vector.extract_strided_slice %1 {offsets = [0, 0], sizes = [64, 1], strides = [1, 1]} : vector<64x2xf32> to vector<64x1xf32>
    %3 = vector.extract_strided_slice %0 {offsets = [0, 0], sizes = [1, 128], strides = [1, 1]} : vector<2x128xf32> to vector<1x128xf32>
    %4 = vector.broadcast %2 : vector<64x1xf32> to vector<64x128xf32>
    %5 = vector.broadcast %3 : vector<1x128xf32> to vector<64x128xf32>
    %6 = arith.mulf %4, %5 : vector<64x128xf32>
    %7 = vector.extract_strided_slice %1 {offsets = [0, 1], sizes = [64, 1], strides = [1, 1]} : vector<64x2xf32> to vector<64x1xf32>
    %8 = vector.extract_strided_slice %0 {offsets = [1, 0], sizes = [1, 128], strides = [1, 1]} : vector<2x128xf32> to vector<1x128xf32>
    %9 = vector.broadcast %7 : vector<64x1xf32> to vector<64x128xf32>
    %10 = vector.broadcast %8 : vector<1x128xf32> to vector<64x128xf32>
    %11 = arith.mulf %9, %10 : vector<64x128xf32>
    %12 = arith.addf %6, %11 : vector<64x128xf32>
    %c0_3 = arith.constant 0 : index
    %c0_4 = arith.constant 0 : index
    %13 = vector.load %arg3[%c0_3, %c0_4] : memref<64x1xf32, #tpu.memory_space<vmem>>, vector<64x1xf32>
    %14 = vector.broadcast %13 : vector<64x1xf32> to vector<64x128xf32>
    %15 = arith.addf %12, %14 : vector<64x128xf32>
    %cst = arith.constant 0.000000e+00 : f32
    %16 = vector.broadcast %cst : f32 to vector<64x128xf32>
    %17 = arith.maximumf %15, %16 : vector<64x128xf32>
    %c0_5 = arith.constant 0 : index
    %c0_6 = arith.constant 0 : index
    %18 = vector.load %arg4[%c0_5, %c0_6] : memref<128x64xf32, #tpu.memory_space<vmem>>, vector<128x64xf32>
    %cst_7 = arith.constant dense<0.000000e+00> : vector<128x128xf32>
    %19 = tpu.matmul %18, %17, %cst_7 {dimension_numbers = #tpu.dot_dimension_numbers<[1], [0], [0], [1], [0, 0, 1, 1], [], []>} : vector<128x64xf32>, vector<64x128xf32>, vector<128x128xf32> -> vector<128x128xf32>
    %c0_8 = arith.constant 0 : index
    %c0_9 = arith.constant 0 : index
    %20 = vector.load %arg5[%c0_8, %c0_9] : memref<128x1xf32, #tpu.memory_space<vmem>>, vector<128x1xf32>
    %21 = vector.broadcast %20 : vector<128x1xf32> to vector<128x128xf32>
    %22 = arith.addf %19, %21 : vector<128x128xf32>
    %cst_10 = arith.constant 0.000000e+00 : f32
    %23 = vector.broadcast %cst_10 : f32 to vector<128x128xf32>
    %24 = arith.maximumf %22, %23 : vector<128x128xf32>
    %c0_11 = arith.constant 0 : index
    %c0_12 = arith.constant 0 : index
    %25 = vector.load %arg6[%c0_11, %c0_12] : memref<128x128xf32, #tpu.memory_space<vmem>>, vector<128x128xf32>
    %cst_13 = arith.constant dense<0.000000e+00> : vector<128x128xf32>
    %26 = tpu.matmul %25, %24, %cst_13 {dimension_numbers = #tpu.dot_dimension_numbers<[1], [0], [0], [1], [0, 0, 1, 1], [], []>} : vector<128x128xf32>, vector<128x128xf32>, vector<128x128xf32> -> vector<128x128xf32>
    %c0_14 = arith.constant 0 : index
    %c0_15 = arith.constant 0 : index
    %27 = vector.load %arg7[%c0_14, %c0_15] : memref<128x1xf32, #tpu.memory_space<vmem>>, vector<128x1xf32>
    %28 = vector.broadcast %27 : vector<128x1xf32> to vector<128x128xf32>
    %29 = arith.addf %26, %28 : vector<128x128xf32>
    %cst_16 = arith.constant 0.000000e+00 : f32
    %30 = vector.broadcast %cst_16 : f32 to vector<128x128xf32>
    %31 = arith.maximumf %29, %30 : vector<128x128xf32>
    %c0_17 = arith.constant 0 : index
    %c0_18 = arith.constant 0 : index
    %32 = vector.load %arg8[%c0_17, %c0_18] : memref<64x128xf32, #tpu.memory_space<vmem>>, vector<64x128xf32>
    %cst_19 = arith.constant dense<0.000000e+00> : vector<64x128xf32>
    %33 = tpu.matmul %32, %31, %cst_19 {dimension_numbers = #tpu.dot_dimension_numbers<[1], [0], [0], [1], [0, 0, 1, 1], [], []>} : vector<64x128xf32>, vector<128x128xf32>, vector<64x128xf32> -> vector<64x128xf32>
    %c0_20 = arith.constant 0 : index
    %c0_21 = arith.constant 0 : index
    %34 = vector.load %arg9[%c0_20, %c0_21] : memref<64x1xf32, #tpu.memory_space<vmem>>, vector<64x1xf32>
    %35 = vector.broadcast %34 : vector<64x1xf32> to vector<64x128xf32>
    %36 = arith.addf %33, %35 : vector<64x128xf32>
    %cst_22 = arith.constant 0.000000e+00 : f32
    %37 = vector.broadcast %cst_22 : f32 to vector<64x128xf32>
    %38 = arith.maximumf %36, %37 : vector<64x128xf32>
    %c0_23 = arith.constant 0 : index
    %c0_24 = arith.constant 0 : index
    %39 = vector.load %arg10[%c0_23, %c0_24] : memref<1x64xf32, #tpu.memory_space<vmem>>, vector<1x64xf32>
    %cst_25 = arith.constant dense<0.000000e+00> : vector<1x128xf32>
    %40 = tpu.matmul %39, %38, %cst_25 {dimension_numbers = #tpu.dot_dimension_numbers<[1], [0], [0], [1], [0, 0, 1, 1], [], []>} : vector<1x64xf32>, vector<64x128xf32>, vector<1x128xf32> -> vector<1x128xf32>
    %c0_26 = arith.constant 0 : index
    %c0_27 = arith.constant 0 : index
    %41 = vector.load %arg11[%c0_26, %c0_27] : memref<1x1xf32, #tpu.memory_space<vmem>>, vector<1x1xf32>
    %42 = vector.broadcast %41 : vector<1x1xf32> to vector<1x128xf32>
    %43 = arith.addf %40, %42 : vector<1x128xf32>
    %c0_28 = arith.constant 0 : index
    %c0_29 = arith.constant 0 : index
    %44 = vector.load %arg12[%c0_28, %c0_29] : memref<1x128xf32, #tpu.memory_space<vmem>>, vector<1x128xf32>
    tpu.vector_store %arg12[%c0_28, %c0_29], %43 {strides = array<i32>} : memref<1x128xf32, #tpu.memory_space<vmem>>, vector<1x128xf32>,
    return
  }
  func.func @transform_0(%arg0: i32) -> (i32, i32) {
    %c0_i32 = arith.constant 0 : i32
    %c0_i32_0 = arith.constant 0 : i32
    return %c0_i32, %arg0 : i32, i32
  }
  func.func @transform_1(%arg0: i32) -> (i32, i32) {
    %c0_i32 = arith.constant 0 : i32
    %c0_i32_0 = arith.constant 0 : i32
    %c0_i32_1 = arith.constant 0 : i32
    return %c0_i32, %c0_i32_0 : i32, i32
  }
  func.func @transform_2(%arg0: i32) -> (i32, i32) {
    %c0_i32 = arith.constant 0 : i32
    %c0_i32_0 = arith.constant 0 : i32
    %c0_i32_1 = arith.constant 0 : i32
    return %c0_i32, %c0_i32_0 : i32, i32
  }
  func.func @transform_3(%arg0: i32) -> (i32, i32) {
    %c0_i32 = arith.constant 0 : i32
    %c0_i32_0 = arith.constant 0 : i32
    %c0_i32_1 = arith.constant 0 : i32
    return %c0_i32, %c0_i32_0 : i32, i32
  }
  func.func @transform_4(%arg0: i32) -> (i32, i32) {
    %c0_i32 = arith.constant 0 : i32
    %c0_i32_0 = arith.constant 0 : i32
    %c0_i32_1 = arith.constant 0 : i32
    return %c0_i32, %c0_i32_0 : i32, i32
  }
  func.func @transform_5(%arg0: i32) -> (i32, i32) {
    %c0_i32 = arith.constant 0 : i32
    %c0_i32_0 = arith.constant 0 : i32
    %c0_i32_1 = arith.constant 0 : i32
    return %c0_i32, %c0_i32_0 : i32, i32
  }
  func.func @transform_6(%arg0: i32) -> (i32, i32) {
    %c0_i32 = arith.constant 0 : i32
    %c0_i32_0 = arith.constant 0 : i32
    %c0_i32_1 = arith.constant 0 : i32
    return %c0_i32, %c0_i32_0 : i32, i32
  }
  func.func @transform_7(%arg0: i32) -> (i32, i32) {
    %c0_i32 = arith.constant 0 : i32
    %c0_i32_0 = arith.constant 0 : i32
    %c0_i32_1 = arith.constant 0 : i32
    return %c0_i32, %c0_i32_0 : i32, i32
  }
  func.func @transform_8(%arg0: i32) -> (i32, i32) {
    %c0_i32 = arith.constant 0 : i32
    %c0_i32_0 = arith.constant 0 : i32
    %c0_i32_1 = arith.constant 0 : i32
    return %c0_i32, %c0_i32_0 : i32, i32
  }
  func.func @transform_9(%arg0: i32) -> (i32, i32) {
    %c0_i32 = arith.constant 0 : i32
    %c0_i32_0 = arith.constant 0 : i32
    %c0_i32_1 = arith.constant 0 : i32
    return %c0_i32, %c0_i32_0 : i32, i32
  }
  func.func @transform_10(%arg0: i32) -> (i32, i32) {
    %c0_i32 = arith.constant 0 : i32
    %c0_i32_0 = arith.constant 0 : i32
    %c0_i32_1 = arith.constant 0 : i32
    return %c0_i32, %c0_i32_0 : i32, i32
  }
  func.func @transform_11(%arg0: i32) -> (i32, i32) {
    %c0_i32 = arith.constant 0 : i32
    %c0_i32_0 = arith.constant 0 : i32
    return %c0_i32, %arg0 : i32, i32
  }
}

</mosaic_0001>

<bundles_post_ra>
// kernel: tpu_custom_call.1
= control target key start
LH: loop header
LB: loop body
LE: loop exit
PB: predicated region body
PF: predicated region fallthrough
CT: control target
= control target key end

     0   :  { %s1849_s0 = inlined_call_operand.vmem [shape: f32[2,256], index: 0, kind: input, shape index: {}]   ;;  %s1850_s1 = inlined_call_operand.vmem [shape: f32[64,2], index: 1, kind: input, shape index: {}]   ;;  %s1851_s2 = inlined_call_operand.vmem [shape: f32[64,1], index: 2, kind: input, shape index: {}]   ;;  %s1852_s3 = inlined_call_operand.vmem [shape: f32[128,64], index: 3, kind: input, shape index: {}]   ;;  %s1853_s4 = inlined_call_operand.vmem [shape: f32[128,1], index: 4, kind: input, shape index: {}]   ;;  %s1854_s5 = inlined_call_operand.vmem [shape: f32[128,128], index: 5, kind: input, shape index: {}]   ;;  %s1855_s6 = inlined_call_operand.vmem [shape: f32[128,1], index: 6, kind: input, shape index: {}]   ;;  %s1856_s7 = inlined_call_operand.vmem [shape: f32[64,128], index: 7, kind: input, shape index: {}]   ;;  %s1857_s8 = inlined_call_operand.vmem [shape: f32[64,1], index: 8, kind: input, shape index: {}]   ;;  %s1858_s9 = inlined_call_operand.vmem [shape: f32[1,64], index: 9, kind: input, shape index: {}]   ;;  %s1859_s10 = inlined_call_operand.<no memory space> [shape: f32[1,1], index: 10, kind: input, shape index: {}]   ;;  %s1860_s11 = inlined_call_operand.hbm [shape: f32[1,256], index: 11, kind: output, shape index: {}]  }
   0x1   :  { %v16_v0 = vstv %s1859_s10 }
   0x2   :  { %17 = vst [vmem:[#allocation2] sm:$0x1] %v16_v0 }
   0x3   :  { %18 = vsyncpa [#allocation4], 0 }
   0x4   :  { %20 = vsyncpa [#allocation4 + $0x1], 0  ;;  %s1421_s19 = smov 0   ;;  %s1423_s20 = smov 0  }
   0x5   :  { %s1425_s21 = smov 0   ;;  %s1427_s22 = smov 0  }
   0x6 LB: > { %s1442_s10 = sadd.s32 4294967295, %s1354_s22   ;;  %s1194_s23 = sadd.s32 4294967294, %s1354_s22   ;;  %s1354_s22 = sphi %s1427_s22, %s1866_s22   ;;  %s1350_s21 = sphi %s1425_s21, %s1865_s21   ;;  %s1346_s20 = sphi %s1423_s20, %s1864_s20   ;;  %s1342_s19 = sphi %s1421_s19, %s1863_s19  }
   0x7   : > { %s1446_s24 = sadd.s32 1, %s1354_s22   ;;  %s269_s25 = sadd.s32 1, %s1350_s21 }
   0x8   : > { %s266_s26 = ssub.s32 %s1354_s22, %s1446_s24  ;;  %p279_p0 = scmp.ne.s32.totalorder %s1350_s21, %s1346_s20 }
   0x9   : > { %p267_p1 = scmp.eq.s32.totalorder %s266_s26, 0  ;;  %p280_p2 = scmp.eq.s32.totalorder %s1442_s10, 1 }
   0xa   : > { %p285_p3 = scmp.ne.s32.totalorder %s1346_s20, %s1342_s19  ;;  %p286_p4 = scmp.eq.s32.totalorder %s1194_s23, 1 }
   0xb   : > { %s1457_s27 = scalar_select %p267_p1, %s1350_s21, %s269_s25  }
   0xc   : > { %p1459_p5 = por %p280_p2, %p279_p0  ;;  %p1463_p6 = por %p286_p4, %p285_p3 }
   0xd   : > { %p1197_p7 = scmp.ge.s32.totalorder %s1354_s22, 1  ;;  %p341_p8 = scmp.lt.s32.totalorder %s1354_s22, 3 }
   0xf   : > { %p342_p9 = pnand %p1197_p7, %p341_p8 }
  0x10   : > { %p379_p10 = scmp.lt.s32.totalorder (!%p342_p9), %s1442_s10, 1  ;;  %s1135_s15 = scalar_lea.hbm (!%p342_p9), %s1860_s11, %s1442_s10 }
  0x11   : > { %345 = sbr.rel (%p342_p9) target bundleno = 1013 (0x3f5), region = 64  ;;  %s1312_s13 = scalar_lea.hbm (!%p342_p9), %s1860_s11, 2 }
  0x16   : > { %v391_v1 = vld [vmem:[%s1850_s1 + $0x38] sm:$0xff]  ;;  %v390_v2 = vld [vmem:[%s1850_s1 + $0x30] sm:$0xff]  ;;  %v389_v3 = vld [vmem:[%s1850_s1 + $0x28] sm:$0xff]  ;;  %v1356_v4 = vmov 0   ;;  %v1357_v5 = vmov 1   ;;  %s380_s23 = scalar_select %p379_p10, %s1442_s10, 1 }
  0x17   : > { %1287 = vset.pattern.permute.xlu2 %v1356_v4  ;;  %1285 = vset.pattern.permute.xlu1 %v1356_v4  ;;  %v388_v6 = vld [vmem:[%s1850_s1 + $0x20] sm:$0xff]  ;;  %v497_v7 = vld [vmem:[%s1851_s2 + $0x38] sm:$0xff]  ;;  %v496_v9 = vld [vmem:[%s1851_s2 + $0x30] sm:$0xff]  ;;  %vm666_vm0 = vcmask 523264  }
  0x18   : > { %1283 = vset.pattern.permute.xlu0 %v1356_v4  ;;  %424 = vperm.xlu1 %1285, %v390_v2   ;;  %v387_v8 = vld [vmem:[%s1850_s1 + $0x18] sm:$0xff]  ;;  %v386_v10 = vld [vmem:[%s1850_s1 + $0x10] sm:$0xff]  ;;  %v495_v11 = vld [vmem:[%s1851_s2 + $0x28] sm:$0xff]  ;;  %s1198_s25 = sshll.u32 %s380_s23, 1 }
  0x19   : > { %429 = vperm.xlu0 %1283, %v391_v1   ;;  %419 = vperm.xlu2 %1287, %v389_v3   ;;  %v385_v12 = vld [vmem:[%s1850_s1 + $0x8] sm:$0xff]  ;;  %v494_v13 = vld [vmem:[%s1851_s2 + $0x20] sm:$0xff]  ;;  %v493_v15 = vld [vmem:[%s1851_s2 + $0x18] sm:$0xff]  ;;  %s382_s18 = scalar_lea.vmem %s1849_s0, %s1198_s25  ;;  %s377_s25 = sand.u32 1, %s1346_s20  }
  0x1a   : > { %v384_v14 = vld [vmem:[%s1850_s1] sm:$0xff]  ;;  %v492_v16 = vld [vmem:[%s1851_s2 + $0x10] sm:$0xff]  ;;  %v491_v18 = vld [vmem:[%s1851_s2 + $0x8] sm:$0xff]  ;;  %s378_s16 = scalar_lea.vmem [#allocation3], %s377_s25  ;;  %s1127_s23 = scalar_lea.sflag [#allocation4], %s377_s25 }
  0x1b   : > { %v490_v17 = vld [vmem:[%s1851_s2] sm:$0xff]  ;;  %v585_v19 = vld [vmem:[%s1853_s4 + $0x78] sm:$0xff]  ;;  %v584_v21 = vld [vmem:[%s1853_s4 + $0x70] sm:$0xff]  ;;  %s1137_s17 = sshll.u32 %s378_s16, 4  ;;  %s1138_s17 = int_to_ptr.vmem [resolvable:$true] %s1137_s17 }
  0x1c   : > { %v581_v20 = vld [vmem:[%s1853_s4 + $0x58] sm:$0xff]  ;;  %v583_v22 = vld [vmem:[%s1853_s4 + $0x68] sm:$0xff]  ;;  %v578_v23 = vld [vmem:[%s1853_s4 + $0x40] sm:$0xff] }
  0x1d   : > { %v582_v24 = vld [vmem:[%s1853_s4 + $0x60] sm:$0xff]  ;;  %v580_v25 = vld [vmem:[%s1853_s4 + $0x50] sm:$0xff]  ;;  %v575_v26 = vld [vmem:[%s1853_s4 + $0x28] sm:$0xff] }
  0x1e   : > { %v579_v27 = vld [vmem:[%s1853_s4 + $0x48] sm:$0xff]  ;;  %v577_v28 = vld [vmem:[%s1853_s4 + $0x38] sm:$0xff]  ;;  %v572_v29 = vld [vmem:[%s1853_s4 + $0x10] sm:$0xff] }
  0x1f   : > { %v576_v30 = vld [vmem:[%s1853_s4 + $0x30] sm:$0xff]  ;;  %v574_v31 = vld [vmem:[%s1853_s4 + $0x20] sm:$0xff]  ;;  %v827_v32 = vld [vmem:[%s1855_s6 + $0x78] sm:$0xff] }
  0x20   : > { %1286 = vset.pattern.permute.xlu1 %v1357_v5  ;;  %v573_v33 = vld [vmem:[%s1853_s4 + $0x18] sm:$0xff]  ;;  %v571_v35 = vld [vmem:[%s1853_s4 + $0x8] sm:$0xff]  ;;  %v824_v36 = vld [vmem:[%s1855_s6 + $0x60] sm:$0xff] }
  0x21   : > { %1284 = vset.pattern.permute.xlu0 %v1357_v5  ;;  %1288 = vset.pattern.permute.xlu2 %v1357_v5  ;;  %v570_v37 = vld [vmem:[%s1853_s4] sm:$0xff]  ;;  %v826_v39 = vld [vmem:[%s1855_s6 + $0x70] sm:$0xff]  ;;  %v821_v40 = vld [vmem:[%s1855_s6 + $0x48] sm:$0xff] }
  0x22   : > { %470 = vperm.xlu0 %1284, %v391_v1   ;;  %466 = vperm.xlu1 %1286, %v390_v2   ;;  %v825_v41 = vld [vmem:[%s1855_s6 + $0x68] sm:$0xff]  ;;  %v823_v44 = vld [vmem:[%s1855_s6 + $0x58] sm:$0xff]  ;;  %v818_v45 = vld [vmem:[%s1855_s6 + $0x30] sm:$0xff] }
  0x23   : > { %462 = vperm.xlu2 %1288, %v389_v3   ;;  %v822_v46 = vld [vmem:[%s1855_s6 + $0x50] sm:$0xff]  ;;  %v383_v50 = vld [vmem:[%s382_s18] sm:$0x3]  ;;  %v815_v55 = vld [vmem:[%s1855_s6 + $0x18] sm:$0xff]  ;;  %s1139_s18 = sshll.u32 %s1135_s15, 4  ;;  %s1140_s18 = int_to_ptr.hbm [resolvable:$true] %s1139_s18 }
  0x24   : > { %v1594_v51 = vperm.slane %v383_v50, 1  ;;  %v1596_v52 = vperm.slane %v383_v50, 0  ;;  %v820_v54 = vld [vmem:[%s1855_s6 + $0x40] sm:$0xff]  ;;  %v819_v56 = vld [vmem:[%s1855_s6 + $0x38] sm:$0xff]  ;;  %v817_v1 = vld [vmem:[%s1855_s6 + $0x28] sm:$0xff]  ;;  %s1306_s26 = sshra.s32 %s1140_s18, 4  ;;  %s1307_s26 = int_to_ptr.hbm [resolvable:$true] %s1306_s26 }
  0x25   : > { %v812_v2 = vld [vmem:[%s1855_s6] sm:$0xff]  ;;  %s1308_s30 = scalar_lea.hbm %s1307_s26, 1  ;;  %p1313_p0 = scmp.lt.s32.totalorder %s1307_s26, %s1860_s11 }
  0x26   : > { %v816_v3 = vld [vmem:[%s1855_s6 + $0x20] sm:$0xff]  ;;  %p1309_p11 = scmp.ne.s32.totalorder %s1307_s26, %s1308_s30  ;;  %p1314_p1 = scmp.lt.s32.totalorder %s1312_s13, %s1308_s30 }
  0x28   : > { %p1310_p12 = pnand %p1309_p11, %p1459_p5  ;;  %p1315_p2 = por %p1314_p1, %p1313_p0 }
  0x2a   : > { %1289 = vset.pattern.permute.xlu1 %v1356_v4  ;;  %458 = vperm.xlu0 %1284, %v388_v6   ;;  %p1311_p13 = pneg %p1310_p12 }
  0x2b   : > { %1290 = vset.pattern.permute.xlu2 %v1356_v4  ;;  %535 = vperm.xlu1 %1289, %v497_v7  }
  0x2c   : > { %414 = vperm.xlu2 %1290, %v388_v6   ;;  %p1316_p3 = pnand %p1315_p2, %p1311_p13 }
  0x32   : > { %454 = vperm.xlu0 %1284, %v387_v8  }
  0x33   : > { %530 = vperm.xlu1 %1289, %v496_v9  }
  0x34   : > { %409 = vperm.xlu2 %1290, %v387_v8  }
  0x3a   : > { %450 = vperm.xlu0 %1284, %v386_v10  }
  0x3b   : > { %525 = vperm.xlu1 %1289, %v495_v11  }
  0x3c   : > { %404 = vperm.xlu2 %1290, %v386_v10  }
  0x42   : > { %446 = vperm.xlu0 %1284, %v385_v12  }
  0x43   : > { %520 = vperm.xlu1 %1289, %v494_v13   ;;  %v814_v13 = vld [vmem:[%s1855_s6 + $0x10] sm:$0xff] }
  0x44   : > { %399 = vperm.xlu2 %1290, %v385_v12  }
  0x4a   : > { %442 = vperm.xlu0 %1284, %v384_v14  }
  0x4b   : > { %515 = vperm.xlu1 %1289, %v493_v15   ;;  %v813_v15 = vld [vmem:[%s1855_s6 + $0x8] sm:$0xff] }
  0x4c   : > { %394 = vperm.xlu2 %1290, %v384_v14   ;;  %v1002_v14 = vld [vmem:[%s1857_s8 + $0x28] sm:$0xff] }
  0x52   : > { %1291 = vset.pattern.permute.xlu0 %v1356_v4 }
  0x53   : > { %510 = vperm.xlu1 %1289, %v492_v16   ;;  %500 = vperm.xlu0 %1291, %v490_v17  }
  0x54   : > { %505 = vperm.xlu2 %1290, %v491_v18  }
  0x5b   : > { %663 = vperm.xlu1 %1289, %v585_v19   ;;  %643 = vperm.xlu0 %1291, %v581_v20  }
  0x5c   : > { %658 = vperm.xlu2 %1290, %v584_v21  }
  0x63   : > { %653 = vperm.xlu1 %1289, %v583_v22   ;;  %628 = vperm.xlu0 %1291, %v578_v23  }
  0x64   : > { %648 = vperm.xlu2 %1290, %v582_v24   ;;  %v1004_v24 = vld [vmem:[%s1857_s8 + $0x38] sm:$0xff] }
  0x6b   : > { %638 = vperm.xlu1 %1289, %v580_v25   ;;  %613 = vperm.xlu0 %1291, %v575_v26   ;;  %v999_v25 = vld [vmem:[%s1857_s8 + $0x10] sm:$0xff] }
  0x6c   : > { %633 = vperm.xlu2 %1290, %v579_v27   ;;  %v1003_v26 = vld [vmem:[%s1857_s8 + $0x30] sm:$0xff] }
  0x73   : > { %623 = vperm.xlu1 %1289, %v577_v28   ;;  %598 = vperm.xlu0 %1291, %v572_v29   ;;  %v420_v34 = vpop.permute.xlu2 %419 }
  0x74   : > { %618 = vperm.xlu2 %1290, %v576_v30   ;;  %v438_v10 = vmul.f32 %v1596_v52, %v420_v34  ;;  %v1095_v34 = vld [vmem:[#allocation2] sm:$0x1] }
  0x7b   : > { %608 = vperm.xlu1 %1289, %v574_v31   ;;  %905 = vperm.xlu0 %1291, %v827_v32  }
  0x7c   : > { %603 = vperm.xlu2 %1290, %v573_v33   ;;  %v1001_v33 = vld [vmem:[%s1857_s8 + $0x20] sm:$0xff] }
  0x7d   : > { %v463_v38 = vpop.permute.xlu2 %462 }
  0x7e   : > { %v479_v11 = vmul.f32 %v1594_v51, %v463_v38 }
  0x80   : > { %v487_v17 = vadd.f32 %v479_v11, %v438_v10  ;;  %v561_v10 = vld [vmem:[%s1852_s3 + $0x38] sm:$0xff]  ;;  %v562_v11 = vld [vmem:[%s1852_s3 + $0x40] sm:$0xff] }
  0x83   : > { %593 = vperm.xlu1 %1289, %v571_v35   ;;  %890 = vperm.xlu0 %1291, %v824_v36   ;;  %v1000_v35 = vld [vmem:[%s1857_s8 + $0x18] sm:$0xff] }
  0x84   : > { %588 = vperm.xlu2 %1290, %v570_v37  }
  0x86   : > { %v415_v47 = vpop.permute.xlu2 %414 }
  0x87   : > { %v437_v20 = vmul.f32 %v1596_v52, %v415_v47  ;;  %v997_v47 = vld [vmem:[%s1857_s8] sm:$0xff] }
  0x8a   : > { %v425_v42 = vpop.permute.xlu1 %424 }
  0x8b   : > { %900 = vperm.xlu1 %1289, %v826_v39   ;;  %875 = vperm.xlu0 %1291, %v821_v40   ;;  %v430_v43 = vpop.permute.xlu0 %429  ;;  %v439_v4 = vmul.f32 %v1596_v52, %v425_v42 }
  0x8c   : > { %895 = vperm.xlu2 %1290, %v825_v41   ;;  %v440_v57 = vmul.f32 %v1596_v52, %v430_v43 }
  0x8e   : > { %v410_v58 = vpop.permute.xlu2 %409 }
  0x8f   : > { %v436_v36 = vmul.f32 %v1596_v52, %v410_v58 }
  0x93   : > { %885 = vperm.xlu1 %1289, %v823_v44   ;;  %860 = vperm.xlu0 %1291, %v818_v45  }
  0x94   : > { %880 = vperm.xlu2 %1290, %v822_v46   ;;  %v471_v48 = vpop.permute.xlu0 %470  ;;  %v467_v49 = vpop.permute.xlu1 %466  ;;  %v998_v46 = vld [vmem:[%s1857_s8 + $0x8] sm:$0xff] }
  0x95   : > { %v481_v53 = vmul.f32 %v1594_v51, %v471_v48  ;;  %v480_v63 = vmul.f32 %v1594_v51, %v467_v49 }
  0x96   : > { %v405_v8 = vpop.permute.xlu2 %404 }
  0x97   : > { %v489_v60 = vadd.f32 %v481_v53, %v440_v57  ;;  %v488_v6 = vadd.f32 %v480_v63, %v439_v4  ;;  %v435_v48 = vmul.f32 %v1596_v52, %v405_v8  ;;  %v568_v4 = vld [vmem:[%s1852_s3 + $0x70] sm:$0xff]  ;;  %v559_v8 = vld [vmem:[%s1852_s3 + $0x28] sm:$0xff] }
  0x9b   : > { %870 = vperm.xlu1 %1289, %v820_v54   ;;  %845 = vperm.xlu0 %1291, %v815_v55  }
  0x9c   : > { %865 = vperm.xlu2 %1290, %v819_v56   ;;  %v459_v59 = vpop.permute.xlu0 %458 }
  0x9d   : > { %v536_v61 = vpop.permute.xlu1 %535  ;;  %v478_v21 = vmul.f32 %v1594_v51, %v459_v59 }
  0x9e   : > { %v545_v62 = vadd.f32 %v536_v61, %v489_v60  ;;  %v400_v22 = vpop.permute.xlu2 %399 }
  0x9f   : > { %v486_v28 = vadd.f32 %v478_v21, %v437_v20  ;;  %v434_v43 = vmul.f32 %v1596_v52, %v400_v22 }
  0xa0   : > { %v553_v0 = vmax.f32 %v545_v62, 0.0 }
  0xa2   : > { %723 = vmatpush.msra.mxu0 %v553_v0  ;;  %1218 = vmatpush.msra.mxu3 %v553_v0 }
  0xa3   : > { %855 = vperm.xlu1 %1289, %v817_v1   ;;  %830 = vperm.xlu0 %1291, %v812_v2   ;;  %v555_v1 = vld [vmem:[%s1852_s3 + $0x8] sm:$0xff] }
  0xa4   : > { %850 = vperm.xlu2 %1290, %v816_v3   ;;  %v455_v5 = vpop.permute.xlu0 %454  ;;  %v567_v2 = vld [vmem:[%s1852_s3 + $0x68] sm:$0xff]  ;;  %v556_v3 = vld [vmem:[%s1852_s3 + $0x10] sm:$0xff] }
  0xa5   : > { %v531_v7 = vpop.permute.xlu1 %530  ;;  %v477_v31 = vmul.f32 %v1594_v51, %v455_v5  ;;  %v557_v5 = vld [vmem:[%s1852_s3 + $0x18] sm:$0xff] }
  0xa6   : > { %v544_v9 = vadd.f32 %v531_v7, %v488_v6  ;;  %v395_v37 = vpop.permute.xlu2 %394  ;;  %v569_v6 = vld [vmem:[%s1852_s3 + $0x78] sm:$0xff]  ;;  %v558_v7 = vld [vmem:[%s1852_s3 + $0x20] sm:$0xff] }
  0xa7   : > { %v485_v39 = vadd.f32 %v477_v31, %v436_v36  ;;  %v433_v53 = vmul.f32 %v1596_v52, %v395_v37  ;;  %v566_v52 = vld [vmem:[%s1852_s3 + $0x60] sm:$0xff] }
  0xa8   : > { %v552_v12 = vmax.f32 %v544_v9, 0.0  ;;  %v560_v9 = vld [vmem:[%s1852_s3 + $0x30] sm:$0xff] }
  0xaa   : > { %724 = vmatpush.msra.mxu0 %v552_v12  ;;  %1219 = vmatpush.msra.mxu3 %v552_v12  ;;  %v563_v12 = vld [vmem:[%s1852_s3 + $0x48] sm:$0xff] }
  0xab   : > { %840 = vperm.xlu1 %1289, %v814_v13   ;;  %1032 = vperm.xlu0 %1291, %v1002_v14   ;;  %v564_v13 = vld [vmem:[%s1852_s3 + $0x50] sm:$0xff]  ;;  %v565_v14 = vld [vmem:[%s1852_s3 + $0x58] sm:$0xff] }
  0xac   : > { %835 = vperm.xlu2 %1290, %v813_v15   ;;  %v451_v16 = vpop.permute.xlu0 %450 }
  0xad   : > { %v526_v18 = vpop.permute.xlu1 %525  ;;  %v476_v44 = vmul.f32 %v1594_v51, %v451_v16 }
  0xae   : > { %v543_v19 = vadd.f32 %v526_v18, %v487_v17  ;;  %v506_v54 = vpop.permute.xlu2 %505 }
  0xaf   : > { %v484_v55 = vadd.f32 %v476_v44, %v435_v48 }
  0xb0   : > { %v551_v23 = vmax.f32 %v543_v19, 0.0 }
  0xb2   : > { %725 = vmatpush.msra.mxu0 %v551_v23  ;;  %1220 = vmatpush.msra.mxu3 %v551_v23 }
  0xb3   : > { %1042 = vperm.xlu1 %1289, %v1004_v24   ;;  %1017 = vperm.xlu0 %1291, %v999_v25  }
  0xb4   : > { %1037 = vperm.xlu2 %1290, %v1003_v26   ;;  %v447_v27 = vpop.permute.xlu0 %446 }
  0xb5   : > { %v521_v29 = vpop.permute.xlu1 %520  ;;  %v475_v41 = vmul.f32 %v1594_v51, %v447_v27 }
  0xb6   : > { %v542_v30 = vadd.f32 %v521_v29, %v486_v28  ;;  %v659_v22 = vpop.permute.xlu2 %658 }
  0xb7   : > { %v483_v49 = vadd.f32 %v475_v41, %v434_v43 }
  0xb8   : > { %v550_v32 = vmax.f32 %v542_v30, 0.0 }
  0xb9   : > { %v539_v60 = vadd.f32 %v506_v54, %v483_v49 }
  0xba   : > { %726 = vmatpush.msra.mxu0 %v550_v32  ;;  %1221 = vmatpush.msra.mxu3 %v550_v32 }
  0xbb   : > { %1027 = vperm.xlu1 %1289, %v1001_v33   ;;  %1098 = vperm.xlu0 %1291, %v1095_v34   ;;  %v547_v63 = vmax.f32 %v539_v60, 0.0 }
  0xbc   : > { %1022 = vperm.xlu2 %1290, %v1000_v35   ;;  %v443_v38 = vpop.permute.xlu0 %442 }
  0xbd   : > { %v516_v40 = vpop.permute.xlu1 %515  ;;  %v474_v50 = vmul.f32 %v1594_v51, %v443_v38  ;;  %v554_v51 = vld [vmem:[%s1852_s3] sm:$0xff] }
  0xbe   : > { %v541_v42 = vadd.f32 %v516_v40, %v485_v39  ;;  %v649_v31 = vpop.permute.xlu2 %648 }
  0xbf   : > { %v482_v59 = vadd.f32 %v474_v50, %v433_v53 }
  0xc0   : > { %v549_v45 = vmax.f32 %v541_v42, 0.0 }
  0xc2   : > { %727 = vmatpush.msra.mxu0 %v549_v45  ;;  %1222 = vmatpush.msra.mxu3 %v549_v45 }
  0xc3   : > { %1012 = vperm.xlu1 %1289, %v998_v46  }
  0xc4   : > { %1007 = vperm.xlu2 %1290, %v997_v47  }
  0xc5   : > { %v511_v56 = vpop.permute.xlu1 %510  ;;  %v501_v57 = vpop.permute.xlu0 %500 }
  0xc6   : > { %v540_v58 = vadd.f32 %v511_v56, %v484_v55  ;;  %v538_v62 = vadd.f32 %v501_v57, %v482_v59  ;;  %v634_v43 = vpop.permute.xlu2 %633 }
  0xc8   : > { %v548_v61 = vmax.f32 %v540_v58, 0.0  ;;  %v546_v0 = vmax.f32 %v538_v62, 0.0 }
  0xca   : > { %728 = vmatpush.msra.mxu0 %v548_v61  ;;  %1223 = vmatpush.msra.mxu3 %v548_v61 }
  0xcc   : > { %729 = vmatpush.msra.mxu0 %v547_v63  ;;  %1224 = vmatpush.msra.mxu3 %v547_v63 }
  0xcd   : > { %v664_v20 = vpop.permute.xlu1 %663  ;;  %v644_v41 = vpop.permute.xlu0 %643 }
  0xce   : > { %730 = vmatpush.msra.mxu0 %v546_v0  ;;  %1225 = vmatpush.msra.mxu3 %v546_v0  ;;  %v619_v47 = vpop.permute.xlu2 %618 }
  0xcf   : > { %1199 = vmatmul.msk.f32.vlgmr.msra.gmra.mxu0 %vm666_vm0, %v554_v51  ;;  %1211 = vmatmul.msk.f32.vlgmr.msra.gmra.mxu3 %vm666_vm0, %v566_v52 }
  0xd5   : > { %v654_v27 = vpop.permute.xlu1 %653  ;;  %v629_v45 = vpop.permute.xlu0 %628 }
  0xd6   : > { %v604_v63 = vpop.permute.xlu2 %603 }
  0xd7   : > { %1200 = vmatmul.msk.f32.gmra.mxu0 %vm666_vm0, %v555_v1  ;;  %1212 = vmatmul.msk.f32.gmra.mxu3 %vm666_vm0, %v567_v2 }
  0xdd   : > { %v639_v42 = vpop.permute.xlu1 %638  ;;  %v614_v57 = vpop.permute.xlu0 %613 }
  0xdf   : > { %1201 = vmatmul.msk.f32.gmra.mxu0 %vm666_vm0, %v556_v3  ;;  %1213 = vmatmul.msk.f32.gmra.mxu3 %vm666_vm0, %v568_v4 }
  0xe5   : > { %v624_v46 = vpop.permute.xlu1 %623  ;;  %v599_v4 = vpop.permute.xlu0 %598 }
  0xe7   : > { %1202 = vmatmul.msk.f32.gmra.mxu0 %vm666_vm0, %v557_v5  ;;  %1214 = vmatmul.msk.f32.gmra.mxu3 %vm666_vm0, %v569_v6 }
  0xed   : > { %v609_v60 = vpop.permute.xlu1 %608 }
  0xef   : > { %1203 = vmatmul.msk.f32.gmra.mxu0 %vm666_vm0, %v558_v7 }
  0xf5   : > { %v594_v7 = vpop.permute.xlu1 %593 }
  0xf7   : > { %1204 = vmatmul.msk.f32.gmra.mxu0 %vm666_vm0, %v559_v8 }
  0xff   : > { %1205 = vmatmul.msk.f32.gmra.mxu0 %vm666_vm0, %v560_v9 }
 0x107   : > { %1206 = vmatmul.msk.f32.gmra.mxu0 %vm666_vm0, %v561_v10  ;;  %v589_v10 = vpop.permute.xlu2 %588 }
 0x10f   : > { %1207 = vmatmul.msk.f32.gmra.mxu0 %vm666_vm0, %v562_v11 }
 0x117   : > { %1208 = vmatmul.msk.f32.gmra.mxu0 %vm666_vm0, %v563_v12 }
 0x11f   : > { %1209 = vmatmul.msk.f32.gmra.mxu0 %vm666_vm0, %v564_v13 }
 0x127   : > { %1210 = vmatmul.msk.f32.gmra.mxu0 %vm666_vm0, %v565_v14 }
 0x14c   : > { %v1726_v15 = vpop.f32.mrf.mxu0 }
 0x14d   : > { %v733_v11 = vadd.f32 %v1726_v15, %v589_v10  ;;  %v797_v15 = vld [vmem:[%s1854_s5 + $0x8] sm:$0xff] }
 0x14f   : > { %v780_v14 = vmax.f32 %v733_v11, 0.0 }
 0x152   : > { %v768_v16 = vpop.f32.mrf.mxu3 }
 0x153   : > { %v769_v32 = vadd.f32 %v768_v16, %v649_v31  ;;  %v796_v16 = vld [vmem:[%s1854_s5] sm:$0xff] }
 0x154   : > { %v1728_v17 = vpop.f32.mrf.mxu0 }
 0x155   : > { %v792_v35 = vmax.f32 %v769_v32, 0.0  ;;  %v736_v8 = vadd.f32 %v1728_v17, %v594_v7  ;;  %v806_v17 = vld [vmem:[%s1854_s5 + $0x50] sm:$0xff] }
 0x157   : > { %v781_v13 = vmax.f32 %v736_v8, 0.0 }
 0x15a   : > { %v771_v18 = vpop.f32.mrf.mxu3 }
 0x15b   : > { %v772_v29 = vadd.f32 %v771_v18, %v654_v27  ;;  %v807_v18 = vld [vmem:[%s1854_s5 + $0x58] sm:$0xff]  ;;  %v802_v27 = vld [vmem:[%s1854_s5 + $0x30] sm:$0xff] }
 0x15c   : > { %v1730_v19 = vpop.f32.mrf.mxu0 }
 0x15d   : > { %v793_v34 = vmax.f32 %v772_v29, 0.0  ;;  %v739_v5 = vadd.f32 %v1730_v19, %v599_v4  ;;  %v798_v19 = vld [vmem:[%s1854_s5 + $0x10] sm:$0xff]  ;;  %v804_v29 = vld [vmem:[%s1854_s5 + $0x40] sm:$0xff] }
 0x15f   : > { %v782_v12 = vmax.f32 %v739_v5, 0.0 }
 0x162   : > { %v774_v21 = vpop.f32.mrf.mxu3 }
 0x163   : > { %v775_v25 = vadd.f32 %v774_v21, %v659_v22  ;;  %v799_v21 = vld [vmem:[%s1854_s5 + $0x18] sm:$0xff]  ;;  %v809_v22 = vld [vmem:[%s1854_s5 + $0x68] sm:$0xff] }
 0x164   : > { %v741_v23 = vpop.f32.mrf.mxu0 }
 0x165   : > { %v794_v33 = vmax.f32 %v775_v25, 0.0  ;;  %v742_v2 = vadd.f32 %v741_v23, %v604_v63  ;;  %v800_v23 = vld [vmem:[%s1854_s5 + $0x20] sm:$0xff]  ;;  %v801_v25 = vld [vmem:[%s1854_s5 + $0x28] sm:$0xff] }
 0x167   : > { %v783_v9 = vmax.f32 %v742_v2, 0.0 }
 0x16a   : > { %v777_v24 = vpop.f32.mrf.mxu3 }
 0x16b   : > { %v778_v26 = vadd.f32 %v777_v24, %v664_v20  ;;  %v808_v20 = vld [vmem:[%s1854_s5 + $0x60] sm:$0xff]  ;;  %v810_v24 = vld [vmem:[%s1854_s5 + $0x70] sm:$0xff] }
 0x16c   : > { %v744_v28 = vpop.f32.mrf.mxu0 }
 0x16d   : > { %v795_v30 = vmax.f32 %v778_v26, 0.0  ;;  %v745_v52 = vadd.f32 %v744_v28, %v609_v60  ;;  %v811_v26 = vld [vmem:[%s1854_s5 + $0x78] sm:$0xff] }
 0x16e   : > { %v803_v28 = vld [vmem:[%s1854_s5 + $0x38] sm:$0xff] }
 0x16f   : > { %908 = vmatpush.msra.mxu1 %v795_v30  ;;  %1226 = vmatpush.msrb.mxu3 %v795_v30  ;;  %v784_v6 = vmax.f32 %v745_v52, 0.0  ;;  %v805_v30 = vld [vmem:[%s1854_s5 + $0x48] sm:$0xff] }
 0x171   : > { %909 = vmatpush.msra.mxu1 %v794_v33  ;;  %1227 = vmatpush.msrb.mxu3 %v794_v33 }
 0x173   : > { %910 = vmatpush.msra.mxu1 %v793_v34  ;;  %1228 = vmatpush.msrb.mxu3 %v793_v34 }
 0x174   : > { %v747_v36 = vpop.f32.mrf.mxu0 }
 0x175   : > { %911 = vmatpush.msra.mxu1 %v792_v35  ;;  %1229 = vmatpush.msrb.mxu3 %v792_v35  ;;  %v748_v0 = vadd.f32 %v747_v36, %v614_v57 }
 0x177   : > { %v785_v3 = vmax.f32 %v748_v0, 0.0 }
 0x17c   : > { %v750_v37 = vpop.f32.mrf.mxu0 }
 0x17d   : > { %v751_v61 = vadd.f32 %v750_v37, %v619_v47 }
 0x17f   : > { %v786_v1 = vmax.f32 %v751_v61, 0.0 }
 0x184   : > { %v753_v38 = vpop.f32.mrf.mxu0 }
 0x185   : > { %v754_v58 = vadd.f32 %v753_v38, %v624_v46 }
 0x187   : > { %v787_v51 = vmax.f32 %v754_v58, 0.0 }
 0x18c   : > { %v756_v39 = vpop.f32.mrf.mxu0 }
 0x18d   : > { %v757_v55 = vadd.f32 %v756_v39, %v629_v45 }
 0x18f   : > { %v788_v62 = vmax.f32 %v757_v55, 0.0 }
 0x194   : > { %v759_v40 = vpop.f32.mrf.mxu0 }
 0x195   : > { %v760_v53 = vadd.f32 %v759_v40, %v634_v43  ;;  %v906_v40 = vpop.permute.xlu0 %905  ;;  %v901_v43 = vpop.permute.xlu1 %900 }
 0x197   : > { %v789_v59 = vmax.f32 %v760_v53, 0.0 }
 0x19c   : > { %v762_v44 = vpop.f32.mrf.mxu0 }
 0x19d   : > { %v763_v49 = vadd.f32 %v762_v44, %v639_v42  ;;  %v896_v44 = vpop.permute.xlu2 %895 }
 0x19f   : > { %v790_v56 = vmax.f32 %v763_v49, 0.0 }
 0x1a4   : > { %v765_v48 = vpop.f32.mrf.mxu0 }
 0x1a5   : > { %v766_v50 = vadd.f32 %v765_v48, %v644_v41  ;;  %v891_v48 = vpop.permute.xlu0 %890 }
 0x1a7   : > { %v791_v54 = vmax.f32 %v766_v50, 0.0 }
 0x1a9   : > { %912 = vmatpush.msra.mxu1 %v791_v54  ;;  %1230 = vmatpush.msrb.mxu3 %v791_v54 }
 0x1ab   : > { %913 = vmatpush.msra.mxu1 %v790_v56  ;;  %1231 = vmatpush.msrb.mxu3 %v790_v56  ;;  %v886_v56 = vpop.permute.xlu1 %885 }
 0x1ad   : > { %914 = vmatpush.msra.mxu1 %v789_v59  ;;  %1232 = vmatpush.msrb.mxu3 %v789_v59  ;;  %v881_v59 = vpop.permute.xlu2 %880  ;;  %v876_v0 = vpop.permute.xlu0 %875 }
 0x1af   : > { %915 = vmatpush.msra.mxu1 %v788_v62  ;;  %1233 = vmatpush.msrb.mxu3 %v788_v62 }
 0x1b1   : > { %916 = vmatpush.msra.mxu1 %v787_v51  ;;  %1234 = vmatpush.msrb.mxu3 %v787_v51 }
 0x1b3   : > { %917 = vmatpush.msra.mxu1 %v786_v1  ;;  %1235 = vmatpush.msrb.mxu3 %v786_v1  ;;  %v871_v52 = vpop.permute.xlu1 %870 }
 0x1b5   : > { %918 = vmatpush.msra.mxu1 %v785_v3  ;;  %1236 = vmatpush.msrb.mxu3 %v785_v3  ;;  %v866_v2 = vpop.permute.xlu2 %865  ;;  %v861_v3 = vpop.permute.xlu0 %860 }
 0x1b7   : > { %919 = vmatpush.msra.mxu1 %v784_v6  ;;  %1237 = vmatpush.msrb.mxu3 %v784_v6 }
 0x1b9   : > { %920 = vmatpush.msra.mxu1 %v783_v9  ;;  %1238 = vmatpush.msrb.mxu3 %v783_v9 }
 0x1bb   : > { %921 = vmatpush.msra.mxu1 %v782_v12  ;;  %1239 = vmatpush.msrb.mxu3 %v782_v12  ;;  %v856_v7 = vpop.permute.xlu1 %855 }
 0x1bd   : > { %922 = vmatpush.msra.mxu1 %v781_v13  ;;  %1240 = vmatpush.msrb.mxu3 %v781_v13  ;;  %v851_v10 = vpop.permute.xlu2 %850  ;;  %v846_v13 = vpop.permute.xlu0 %845 }
 0x1bf   : > { %923 = vmatpush.msra.mxu1 %v780_v14  ;;  %1241 = vmatpush.msrb.mxu3 %v780_v14 }
 0x1c0   : > { %924 = vmatmul.f32.vlgmr.msra.gmra.mxu1 %v796_v16  ;;  %954 = vmatmul.f32.vlgmr.msrb.gmra.mxu3 %v806_v17 }
 0x1c8   : > { %927 = vmatmul.f32.gmra.mxu1 %v797_v15  ;;  %957 = vmatmul.f32.gmra.mxu3 %v807_v18 }
 0x1d0   : > { %930 = vmatmul.f32.gmra.mxu1 %v798_v19  ;;  %960 = vmatmul.f32.gmra.mxu3 %v808_v20  ;;  %v841_v20 = vpop.permute.xlu1 %840 }
 0x1d8   : > { %933 = vmatmul.f32.gmra.mxu1 %v799_v21  ;;  %963 = vmatmul.f32.gmra.mxu3 %v809_v22 }
 0x1e0   : > { %936 = vmatmul.f32.gmra.mxu1 %v800_v23  ;;  %966 = vmatmul.f32.gmra.mxu3 %v810_v24  ;;  %v836_v23 = vpop.permute.xlu2 %835 }
 0x1e8   : > { %939 = vmatmul.f32.gmra.mxu1 %v801_v25  ;;  %969 = vmatmul.f32.gmra.mxu3 %v811_v26  ;;  %v831_v26 = vpop.permute.xlu0 %830 }
 0x1f0   : > { %942 = vmatmul.f32.gmra.mxu1 %v802_v27 }
 0x1f8   : > { %945 = vmatmul.f32.gmra.mxu1 %v803_v28 }
 0x200   : > { %948 = vmatmul.f32.gmra.mxu1 %v804_v29 }
 0x208   : > { %951 = vmatmul.f32.gmra.mxu1 %v805_v30 }
 0x23d   : > { %v1783_v31 = vpop.f32.mrf.mxu1 }
 0x23e   : > { %v926_v27 = vadd.f32 %v1783_v31, %v831_v26  ;;  %v991_v31 = vld [vmem:[%s1856_s7 + $0x10] sm:$0xff] }
 0x240   : > { %v973_v30 = vmax.f32 %v926_v27, 0.0 }
 0x243   : > { %v955_v32 = vpop.f32.mrf.mxu3 }
 0x244   : > { %v956_v60 = vadd.f32 %v955_v32, %v881_v59  ;;  %v989_v32 = vld [vmem:[%s1856_s7] sm:$0xff] }
 0x245   : > { %v1785_v33 = vpop.f32.mrf.mxu1 }
 0x246   : > { %v983_v51 = vmax.f32 %v956_v60, 0.0  ;;  %v929_v24 = vadd.f32 %v1785_v33, %v836_v23  ;;  %v990_v33 = vld [vmem:[%s1856_s7 + $0x8] sm:$0xff] }
 0x248   : > { %v974_v29 = vmax.f32 %v929_v24, 0.0 }
 0x24b   : > { %v958_v34 = vpop.f32.mrf.mxu3 }
 0x24c   : > { %v959_v57 = vadd.f32 %v958_v34, %v886_v56  ;;  %v992_v34 = vld [vmem:[%s1856_s7 + $0x18] sm:$0xff] }
 0x24d   : > { %v931_v35 = vpop.f32.mrf.mxu1 }
 0x24e   : > { %v984_v63 = vmax.f32 %v959_v57, 0.0  ;;  %v932_v21 = vadd.f32 %v931_v35, %v841_v20  ;;  %v993_v35 = vld [vmem:[%s1856_s7 + $0x20] sm:$0xff] }
 0x250   : > { %v975_v28 = vmax.f32 %v932_v21, 0.0 }
 0x253   : > { %v961_v36 = vpop.f32.mrf.mxu3 }
 0x254   : > { %v962_v54 = vadd.f32 %v961_v36, %v891_v48  ;;  %v994_v36 = vld [vmem:[%s1856_s7 + $0x28] sm:$0xff]  ;;  %v1033_v48 = vpop.permute.xlu0 %1032 }
 0x255   : > { %v934_v37 = vpop.f32.mrf.mxu1 }
 0x256   : > { %v985_v61 = vmax.f32 %v962_v54, 0.0  ;;  %v935_v18 = vadd.f32 %v934_v37, %v846_v13  ;;  %v995_v37 = vld [vmem:[%s1856_s7 + $0x30] sm:$0xff] }
 0x258   : > { %v976_v25 = vmax.f32 %v935_v18, 0.0 }
 0x25b   : > { %v964_v38 = vpop.f32.mrf.mxu3 }
 0x25c   : > { %v965_v50 = vadd.f32 %v964_v38, %v896_v44  ;;  %v996_v38 = vld [vmem:[%s1856_s7 + $0x38] sm:$0xff] }
 0x25d   : > { %v937_v39 = vpop.f32.mrf.mxu1 }
 0x25e   : > { %v986_v58 = vmax.f32 %v965_v50, 0.0  ;;  %v938_v17 = vadd.f32 %v937_v39, %v851_v10 }
 0x260   : > { %v977_v22 = vmax.f32 %v938_v17, 0.0 }
 0x263   : > { %v967_v41 = vpop.f32.mrf.mxu3 }
 0x264   : > { %v968_v46 = vadd.f32 %v967_v41, %v901_v43 }
 0x265   : > { %v940_v42 = vpop.f32.mrf.mxu1 }
 0x266   : > { %v987_v55 = vmax.f32 %v968_v46, 0.0  ;;  %v941_v14 = vadd.f32 %v940_v42, %v856_v7  ;;  %v1038_v46 = vpop.permute.xlu2 %1037  ;;  %v1094_v7 = vld [vmem:[%s1858_s9] sm:$0x1] }
 0x268   : > { %v978_v19 = vmax.f32 %v941_v14, 0.0 }
 0x26b   : > { %v970_v45 = vpop.f32.mrf.mxu3 }
 0x26c   : > { %v971_v47 = vadd.f32 %v970_v45, %v906_v40  ;;  %v1043_v45 = vpop.permute.xlu1 %1042 }
 0x26d   : > { %v943_v49 = vpop.f32.mrf.mxu1 }
 0x26e   : > { %v988_v53 = vmax.f32 %v971_v47, 0.0  ;;  %v944_v11 = vadd.f32 %v943_v49, %v861_v3 }
 0x270   : > { %1045 = vmatpush.msra.mxu2 %v988_v53  ;;  %v979_v15 = vmax.f32 %v944_v11, 0.0 }
 0x272   : > { %1046 = vmatpush.msra.mxu2 %v987_v55  ;;  %v1023_v55 = vpop.permute.xlu2 %1022 }
 0x274   : > { %1047 = vmatpush.msra.mxu2 %v986_v58  ;;  %v1028_v49 = vpop.permute.xlu1 %1027 }
 0x275   : > { %v946_v62 = vpop.f32.mrf.mxu1 }
 0x276   : > { %1048 = vmatpush.msra.mxu2 %v985_v61  ;;  %v947_v8 = vadd.f32 %v946_v62, %v866_v2  ;;  %v1018_v62 = vpop.permute.xlu0 %1017 }
 0x278   : > { %1049 = vmatpush.msra.mxu2 %v984_v63  ;;  %v980_v16 = vmax.f32 %v947_v8, 0.0 }
 0x27a   : > { %1050 = vmatpush.msra.mxu2 %v983_v51  ;;  %v1008_v2 = vpop.permute.xlu2 %1007 }
 0x27c   : > { %v1013_v51 = vpop.permute.xlu1 %1012 }
 0x27d   : > { %v949_v1 = vpop.f32.mrf.mxu1 }
 0x27e   : > { %v950_v5 = vadd.f32 %v949_v1, %v871_v52  ;;  %v1099_v8 = vpop.permute.xlu0 %1098 }
 0x280   : > { %v981_v12 = vmax.f32 %v950_v5, 0.0 }
 0x285   : > { %v952_v4 = vpop.f32.mrf.mxu1 }
 0x286   : > { %v953_v6 = vadd.f32 %v952_v4, %v876_v0 }
 0x288   : > { %v982_v9 = vmax.f32 %v953_v6, 0.0 }
 0x28a   : > { %1051 = vmatpush.msra.mxu2 %v982_v9  ;;  %v1101_v9 = vperm.slane %v1099_v8, 0 }
 0x28c   : > { %1052 = vmatpush.msra.mxu2 %v981_v12 }
 0x28e   : > { %1053 = vmatpush.msra.mxu2 %v980_v16 }
 0x290   : > { %1054 = vmatpush.msra.mxu2 %v979_v15 }
 0x292   : > { %1055 = vmatpush.msra.mxu2 %v978_v19 }
 0x294   : > { %1056 = vmatpush.msra.mxu2 %v977_v22 }
 0x296   : > { %1057 = vmatpush.msra.mxu2 %v976_v25 }
 0x298   : > { %1058 = vmatpush.msra.mxu2 %v975_v28 }
 0x29a   : > { %1059 = vmatpush.msra.mxu2 %v974_v29 }
 0x29c   : > { %1060 = vmatpush.msra.mxu2 %v973_v30 }
 0x29d   : > { %1061 = vmatmul.f32.vlgmr.msra.gmra.mxu2 %v989_v32 }
 0x2a5   : > { %1064 = vmatmul.f32.gmra.mxu2 %v990_v33 }
 0x2ad   : > { %1067 = vmatmul.f32.gmra.mxu2 %v991_v31 }
 0x2b5   : > { %1070 = vmatmul.f32.gmra.mxu2 %v992_v34 }
 0x2bd   : > { %1073 = vmatmul.f32.gmra.mxu2 %v993_v35 }
 0x2c5   : > { %1076 = vmatmul.f32.gmra.mxu2 %v994_v36 }
 0x2cd   : > { %1079 = vmatmul.f32.gmra.mxu2 %v995_v37 }
 0x2d5   : > { %1082 = vmatmul.f32.gmra.mxu2 %v996_v38 }
 0x320   : > { %v1062_v39 = vpop.f32.mrf.mxu2 }
 0x321   : > { %v1063_v3 = vadd.f32 %v1062_v39, %v1008_v2 }
 0x323   : > { %v1086_v6 = vmax.f32 %v1063_v3, 0.0 }
 0x328   : > { %v1065_v40 = vpop.f32.mrf.mxu2 }
 0x329   : > { %v1066_v52 = vadd.f32 %v1065_v40, %v1013_v51 }
 0x32b   : > { %v1087_v5 = vmax.f32 %v1066_v52, 0.0 }
 0x330   : > { %v1068_v41 = vpop.f32.mrf.mxu2 }
 0x331   : > { %v1069_v63 = vadd.f32 %v1068_v41, %v1018_v62 }
 0x333   : > { %v1088_v4 = vmax.f32 %v1069_v63, 0.0 }
 0x338   : > { %v1071_v42 = vpop.f32.mrf.mxu2 }
 0x339   : > { %v1072_v60 = vadd.f32 %v1071_v42, %v1023_v55 }
 0x33b   : > { %v1089_v1 = vmax.f32 %v1072_v60, 0.0 }
 0x340   : > { %v1074_v43 = vpop.f32.mrf.mxu2 }
 0x341   : > { %v1075_v58 = vadd.f32 %v1074_v43, %v1028_v49 }
 0x343   : > { %v1090_v0 = vmax.f32 %v1075_v58, 0.0 }
 0x348   : > { %v1077_v44 = vpop.f32.mrf.mxu2 }
 0x349   : > { %v1078_v56 = vadd.f32 %v1077_v44, %v1033_v48 }
 0x34b   : > { %v1091_v61 = vmax.f32 %v1078_v56, 0.0 }
 0x350   : > { %v1080_v47 = vpop.f32.mrf.mxu2 }
 0x351   : > { %v1081_v53 = vadd.f32 %v1080_v47, %v1038_v46 }
 0x353   : > { %v1092_v59 = vmax.f32 %v1081_v53, 0.0 }
 0x358   : > { %v1083_v50 = vpop.f32.mrf.mxu2 }
 0x359   : > { %v1084_v54 = vadd.f32 %v1083_v50, %v1043_v45 }
 0x35b   : > { %v1093_v57 = vmax.f32 %v1084_v54, 0.0 }
 0x35d   : > { %1113 = vmatpush.msra.mxu3 %v1093_v57 }
 0x35f   : > { %1114 = vmatpush.msra.mxu3 %v1092_v59 }
 0x361   : > { %1115 = vmatpush.msra.mxu3 %v1091_v61 }
 0x363   : > { %1116 = vmatpush.msra.mxu3 %v1090_v0 }
 0x365   : > { %1117 = vmatpush.msra.mxu3 %v1089_v1 }
 0x367   : > { %1118 = vmatpush.msra.mxu3 %v1088_v4 }
 0x369   : > { %1119 = vmatpush.msra.mxu3 %v1087_v5 }
 0x36b   : > { %1120 = vmatpush.msra.mxu3 %v1086_v6 }
 0x36c   : > { %1215 = vmatmul.msk.f32.vlgmr.msra.gmra.mxu3 %vm666_vm0, %v1094_v7 }
 0x3ef   : > { %v1122_v10 = vpop.f32.mrf.mxu3 }
 0x3f0   : > { %v1123_v11 = vadd.f32 %v1122_v10, %v1101_v9 }
 0x3f2   : > { %1125 = vst [vmem:[%s378_s16] sm:$0x1] %v1123_v11 }
 0x3f3   : > { %1319 = shalt.err (!%p1316_p3)
}
 0x3f4   : > { %1242 = dma.vmem_to_hbm [thread:$0]  (%p1459_p5), %s1138_s17, 16, %s1140_s18, %s1127_s23  }
 0x3f5 PF: > { %p1248_p4 = scmp.ge.s32.totalorder %s1354_s22, 2  ;;  %s1151_s25 = sand.u32 1, %s1342_s19  }
 0x3f6   : > { %s1152_s16 = scalar_lea.sflag [#allocation4], %s1151_s25 }
 0x3f7   : > { %p1245_p7 = pnand %p1248_p4, %p1463_p6 }
 0x3f9   : > { %p1246_p8 = pneg %p1245_p7 }
 0x3fb   : > { %1337 = dma.done.wait (%p1246_p8), %s1152_s16, 16  }
 0x3fc   : > { %1339 = vsyncadd (%p1246_p8), %s1152_s16, 4294967280  ;;  %p23_p9 = scmp.ge.s32.totalorder %s1446_s24, 4   ;;  %s1863_s19 = smov %s1346_s20 }
 0x3fd   : > { %s1864_s20 = smov %s1350_s21  ;;  %s1865_s21 = smov %s1457_s27 }
 0x3fe   : > { %s1866_s22 = smov %s1446_s24  ;;  %25 = sbr.rel (!%p23_p9) target bundleno = 6 (0x6), region = 99 }
 0x403   :  { %1157 = vsyncpa [#allocation4], 1 }
 0x404   :  { %1159 = vsyncpa [#allocation4 + $0x1], 1 }

</bundles_post_ra>
